<compile_context>
chip_gen: v7x
topology: tpu7x:2x2x1
jax: 0.10.0
libtpu: 0.0.40
codegen_flags: <defaults>
</compile_context>

<pallas_src>
import jax
import jax.numpy as jnp
from jax.experimental import pallas as pl
from jax.experimental.pallas import tpu as pltpu

_MiB = 1024 * 1024


def _dispact_kernel(x_ref, o_ref):
    # Compute in f32 regardless of input dtype (matches PyTorch softplus path).
    x = x_ref[...].astype(jnp.float32)
    # PyTorch F.softplus semantics (beta=1, threshold=20):
    #   softplus(x) = x                 if x > 20
    #               = log(1 + exp(x))   otherwise
    safe_x = jnp.minimum(x, 20.0)
    sp = jnp.where(x > 20.0, x, jnp.log1p(jnp.exp(safe_x)))
    # torch.clamp(min=1e-4, max=1e4), cast back to the output dtype in-kernel.
    o_ref[...] = jnp.clip(sp, 0.0001, 10000.0).astype(o_ref.dtype)


def _target_block_bytes():
    """Per-generation block-size target (conservative: fits default scoped VMEM)."""
    try:
        kind = jax.devices()[0].device_kind.lower()
    except Exception:
        kind = ""
    if "v7" in kind:
        return 4 * _MiB   # 2x(in+out) buffers = 16 MiB, under 32 MiB scoped default
    if "v5" in kind:
        return 1 * _MiB   # 4 MiB total, well under v5e's 16 MiB scoped default
    return 2 * _MiB       # v6e / default: 8 MiB total


def disp_act(x):
    """clamp(softplus(x), 1e-4, 1e4), elementwise, via a Pallas TPU kernel."""
    orig_shape = x.shape
    orig_dtype = x.dtype
    flat = x.reshape(-1)
    n = flat.shape[0]

    # Pick the widest lane-dense slab width that divides n exactly (fast path:
    # no padding pass at all).  Otherwise pad once, up to a multiple of 1024.
    width = None
    for cand in (1024, 512, 256, 128):
        if n % cand == 0:
            width = cand
            break
    if width is None:
        width = 1024
        padded = -(-n // width) * width
        flat = jnp.pad(flat, (0, padded - n))
    n_rows = flat.shape[0] // width
    slab = flat.reshape(n_rows, width)

    # Size the per-step block to ~1-4 MiB (generation dependent), rows rounded
    # to a multiple of 32 so sub-32-bit dtypes also satisfy sublane tiling.
    itemsize = jnp.dtype(orig_dtype).itemsize
    row_tile = max(32, (_target_block_bytes() // (width * itemsize)) // 32 * 32)
    if row_tile >= n_rows:
        row_tile = n_rows  # single block; full-array dims satisfy tiling rules
    grid = (pl.cdiv(n_rows, row_tile),)

    cost = pl.CostEstimate(
        flops=5 * n,
        transcendentals=2 * n,          # exp + log1p per element
        bytes_accessed=2 * n * itemsize,  # one read + one write
    )

    out = pl.pallas_call(
        _dispact_kernel,
        out_shape=jax.ShapeDtypeStruct((n_rows, width), orig_dtype),
        grid=grid,
        in_specs=[pl.BlockSpec((row_tile, width), lambda i: (i, 0))],
        out_specs=pl.BlockSpec((row_tile, width), lambda i: (i, 0)),
        compiler_params=pltpu.CompilerParams(
            dimension_semantics=("parallel",)
        ),
        cost_estimate=cost,
    )(slab)

    out_flat = out.reshape(-1)
    if out_flat.shape[0] != n:
        out_flat = out_flat[:n]
    return out_flat.reshape(orig_shape)


if __name__ == "__main__":
    key = jax.random.PRNGKey(0)
    x = jax.random.normal(key, (2, 4, 16, 16), dtype=jnp.float32) * 5.0

    y = disp_act(x)
    jax.block_until_ready(y)

    # Reference check in plain JAX (same softplus/clamp semantics).
    ref = jnp.clip(
        jnp.where(x > 20.0, x, jnp.log1p(jnp.exp(jnp.minimum(x, 20.0)))),
        0.0001,
        10000.0,
    )
    assert y.shape == x.shape and y.dtype == x.dtype
    assert jnp.allclose(y, ref, rtol=1e-6, atol=1e-6)

    print("KERNEL_OK")
</pallas_src>

<mosaic_0001>
module attributes {stable_mosaic.version = 11 : i64} {
  func.func @_dispact_kernel(%arg0: i32, %arg1: memref<2x1024xf32, #tpu.memory_space<vmem>>, %arg2: memref<2x1024xf32, #tpu.memory_space<vmem>>) attributes {dimension_semantics = [#tpu.dimension_semantics<parallel>], iteration_bounds = array<i64: 1>, scalar_prefetch = 0 : i64, scratch_operands = 0 : i64, tpu.core_type = #tpu.core_type<tc>, window_params = [{transform_indices = @transform_0, window_bounds = array<i64: 2, 1024>}, {transform_indices = @transform_1, window_bounds = array<i64: 2, 1024>}]} {
    %c0 = arith.constant 0 : index
    %c0_0 = arith.constant 0 : index
    %0 = vector.load %arg1[%c0, %c0_0] : memref<2x1024xf32, #tpu.memory_space<vmem>>, vector<2x1024xf32>
    %cst = arith.constant 2.000000e+01 : f32
    %1 = vector.broadcast %cst : f32 to vector<2x1024xf32>
    %2 = arith.minimumf %0, %1 : vector<2x1024xf32>
    %cst_1 = arith.constant 2.000000e+01 : f32
    %3 = vector.broadcast %cst_1 : f32 to vector<2x1024xf32>
    %4 = arith.cmpf ogt, %0, %3 : vector<2x1024xf32>
    %5 = math.exp %2 : vector<2x1024xf32>
    %6 = math.log1p %5 : vector<2x1024xf32>
    %7 = arith.select %4, %0, %6 : vector<2x1024xi1>, vector<2x1024xf32>
    %cst_2 = arith.constant 9.99999974E-5 : f32
    %cst_3 = arith.constant 1.000000e+04 : f32
    %8 = vector.broadcast %cst_2 : f32 to vector<2x1024xf32>
    %9 = arith.maximumf %8, %7 : vector<2x1024xf32>
    %10 = vector.broadcast %cst_3 : f32 to vector<2x1024xf32>
    %11 = arith.minimumf %10, %9 : vector<2x1024xf32>
    %c0_4 = arith.constant 0 : index
    %c0_5 = arith.constant 0 : index
    %12 = vector.load %arg2[%c0_4, %c0_5] : memref<2x1024xf32, #tpu.memory_space<vmem>>, vector<2x1024xf32>
    tpu.vector_store %arg2[%c0_4, %c0_5], %11 {strides = array<i32>} : memref<2x1024xf32, #tpu.memory_space<vmem>>, vector<2x1024xf32>,
    return
  }
  func.func @transform_0(%arg0: i32) -> (i32, i32) {
    %c0_i32 = arith.constant 0 : i32
    %c0_i32_0 = arith.constant 0 : i32
    return %arg0, %c0_i32 : i32, i32
  }
  func.func @transform_1(%arg0: i32) -> (i32, i32) {
    %c0_i32 = arith.constant 0 : i32
    %c0_i32_0 = arith.constant 0 : i32
    return %arg0, %c0_i32 : i32, i32
  }
}

</mosaic_0001>

<bundles_post_ra>
// kernel: tpu_custom_call.1
= control target key start
LH: loop header
LB: loop body
LE: loop exit
PB: predicated region body
PF: predicated region fallthrough
CT: control target
= control target key end

     0   :  { %6 = vsyncpa [#allocation3], 0  ;;  %s166_s0 = inlined_call_operand.hbm [shape: f32[2,1024], index: 0, kind: input, shape index: {}]   ;;  %s167_s1 = inlined_call_operand.hbm [shape: f32[2,1024], index: 1, kind: output, shape index: {}]  }
   0x1   :  { %7 = vsyncpa [#allocation4], 0  ;;  %s130_s6 = smov [#allocation2]   ;;  %s82_s10 = scalar_lea.hbm %s166_s0, 256 }
   0x2   :  { %s14_s7 = sshll.u32 %s130_s6, 4  ;;  %p83_p0 = scmp.ne.s32.totalorder %s166_s0, %s82_s10  ;;  %s15_s7 = int_to_ptr.vmem [resolvable:$true] %s14_s7 }
   0x3   :  { %p86_p1 = scmp.lt.u32.totalorder %s82_s10, %s166_s0 }
   0x5   :  { %p88_p2 = pnand %p86_p1, %p83_p0 }
   0x7   :  { %91 = shalt.err (!%p88_p2)
}
   0x8   :  { %s92_s15 = scalar_lea.vmem %s15_s7, 256  ;;  %p97_p4 = scmp.lt.s32.totalorder %s15_s7, %s15_s7 }
   0x9   :  { %p93_p3 = scmp.ne.s32.totalorder %s15_s7, %s92_s15  ;;  %p98_p5 = scmp.lt.s32.totalorder %s92_s15, %s92_s15 }
   0xb   :  { %p99_p6 = por %p98_p5, %p97_p4 }
   0xd   :  { %p100_p7 = pnand %p99_p6, %p93_p3 }
   0xf   :  { %103 = shalt.err (!%p100_p7)
}
  0x10   :  { %17 = dma.hbm_to_vmem [thread:$0]  %s166_s0, 256, %s15_s7, [#allocation3]  }
  0x11   :  { %126 = dma.done.wait [#allocation3], 256  }
  0x12   :  { %127 = vsyncadd [#allocation3], 4294967040  ;;  %v21_v0 = vld [vmem:[#allocation2] sm:$0xff]  ;;  %v22_v1 = vld [vmem:[#allocation2 + $0x8] sm:$0xff]  ;;  %s131_s0 = smov [#allocation5]  }
  0x13   :  { %v23_v2 = vmin.f32 %v21_v0, 20.0  ;;  %v24_v3 = vmin.f32 %v22_v1, 20.0  ;;  %vm25_vm1 = vcmp.gt.f32.partialorder %v21_v0, 20.0  ;;  %vm26_vm3 = vcmp.gt.f32.partialorder %v22_v1, 20.0  ;;  %s63_s18 = sshll.u32 %s131_s0, 4  ;;  %s64_s18 = int_to_ptr.vmem [resolvable:$true] %s63_s18 }
  0x14   :  { %s104_s19 = scalar_lea.vmem %s64_s18, 256  ;;  %p109_p9 = scmp.lt.s32.totalorder %s64_s18, %s64_s18 }
  0x15   :  { %v27_v4 = vmul.f32 1.442695, %v23_v2  ;;  %v29_v5 = vmul.f32 1.442695, %v24_v3  ;;  %p105_p8 = scmp.ne.s32.totalorder %s64_s18, %s104_s19  ;;  %p110_p10 = scmp.lt.s32.totalorder %s104_s19, %s104_s19 }
  0x17   :  { %74 = vpow2.f32 %v27_v4  ;;  %p111_p11 = por %p110_p10, %p109_p9 }
  0x18   :  { %76 = vpow2.f32 %v29_v5 }
  0x19   :  { %p112_p12 = pnand %p111_p11, %p105_p8 }
  0x21   :  { %v75_v6 = vpop.eup %74 }
  0x22   :  { %v77_v7 = vpop.eup %76  ;;  %v31_v8 = vadd.f32 1.0, %v75_v6  ;;  %v34_v10 = vmul.f32 -0.5, %v75_v6  ;;  %v37_v13 = vand.u32 2147483647, %v75_v6 }
  0x23   :  { %v40_v9 = vadd.f32 1.0, %v77_v7  ;;  %v43_v11 = vmul.f32 -0.5, %v77_v7  ;;  %v46_v15 = vand.u32 2147483647, %v77_v7 }
  0x24   :  { %78 = vlog2.f32 %v31_v8  ;;  %v35_v12 = vadd.f32 1.0, %v34_v10  ;;  %vm38_vm0 = vcmp.lt.f32.partialorder %v37_v13, 0.0004427343 }
  0x25   :  { %80 = vlog2.f32 %v40_v9  ;;  %v44_v14 = vadd.f32 1.0, %v43_v11  ;;  %vm47_vm2 = vcmp.lt.f32.partialorder %v46_v15, 0.0004427343 }
  0x26   :  { %v36_v16 = vmul.f32 %v75_v6, %v35_v12 }
  0x27   :  { %v45_v18 = vmul.f32 %v77_v7, %v44_v14 }
  0x2e   :  { %v79_v17 = vpop.eup %78 }
  0x2f   :  { %v81_v19 = vpop.eup %80  ;;  %v33_v20 = vmul.f32 0.6931472, %v79_v17 }
  0x30   :  { %v42_v21 = vmul.f32 0.6931472, %v81_v19 }
  0x31   :  { %v39_v22 = vsel %vm38_vm0, %v36_v16, %v33_v20 }
  0x32   :  { %v49_v23 = vsel %vm25_vm1, %v21_v0, %v39_v22  ;;  %v48_v24 = vsel %vm47_vm2, %v45_v18, %v42_v21 }
  0x33   :  { %v51_v25 = vmax.f32 %v49_v23, 0.0001  ;;  %v50_v26 = vsel %vm26_vm3, %v22_v1, %v48_v24 }
  0x34   :  { %v52_v27 = vmax.f32 %v50_v26, 0.0001 }
  0x35   :  { %v53_v28 = vmin.f32 %v51_v25, 10000.0 }
  0x36   :  { %v54_v29 = vmin.f32 %v52_v27, 10000.0 }
  0x37   :  { %55 = vst [vmem:[#allocation5] sm:$0xff] %v53_v28 }
  0x38   :  { %56 = vst [vmem:[#allocation5 + $0x8] sm:$0xff] %v54_v29 }
  0x39   :  { %115 = shalt.err (!%p112_p12)
}
  0x3a   :  { %s116_s22 = scalar_lea.hbm %s167_s1, 256 }
  0x3b   :  { %p117_p13 = scmp.ne.s32.totalorder %s167_s1, %s116_s22  ;;  %p120_p0 = scmp.lt.u32.totalorder %s116_s22, %s167_s1 }
  0x3d   :  { %p122_p1 = pnand %p120_p0, %p117_p13 }
  0x3f   :  { %125 = shalt.err (!%p122_p1)
}
  0x40   :  { %66 = dma.vmem_to_hbm [thread:$0]  %s64_s18, 256, %s167_s1, [#allocation4]  }
  0x41   :  { %128 = dma.done.wait [#allocation4], 256  }
  0x42   :  { %129 = vsyncadd [#allocation4], 4294967040 }
  0x43   :  { %70 = vsyncpa [#allocation3], 1 }
  0x44   :  { %71 = vsyncpa [#allocation4], 1 }

</bundles_post_ra>
